<compile_context>
chip_gen: v7x
topology: tpu7x:2x2x1
jax: 0.10.0
libtpu: 0.0.40
codegen_flags: <defaults>
</compile_context>

<pallas_src>
import jax
import jax.numpy as jnp
from jax.experimental import pallas as pl
from jax.experimental.pallas import tpu as pltpu

LAYER_SZS = [16, 32, 32, 8]
BN_EPS = 1e-5
_PMAX = 32          # widest layer output -> slab row count
_PCOLS = 8          # b1,g1,be1,b2,g2,be2,b3,pad -> slab column count


def mlp_kernel(x_ref, w1_ref, w2_ref, w3_ref, p_ref, out_ref):
    # x_ref : (16, B)   activations, batch on the lane axis
    # w1_ref: (32, 16), w2_ref: (32, 32), w3_ref: (8, 32)   PyTorch (out, in)
    # p_ref : (32, 8)   packed small params, one per column
    # out   : (8, B)
    x = x_ref[...]
    p = p_ref[...]
    batch = x_ref.shape[1]
    inv_b = jnp.float32(1.0 / batch)

    def bn_relu(h, gamma_col, beta_col):
        # One-pass batch statistics over the lane (batch) axis.
        s = jnp.sum(h, axis=1, keepdims=True)
        s2 = jnp.sum(h * h, axis=1, keepdims=True)
        mean = s * inv_b
        var = s2 * inv_b - mean * mean
        scale = gamma_col * jax.lax.rsqrt(var + BN_EPS)
        shift = beta_col - mean * scale
        return jnp.maximum(h * scale + shift, 0.0)

    # ---- layer 1: Linear -> BN(batch stats) -> ReLU ----
    h = jnp.dot(w1_ref[...], x, preferred_element_type=jnp.float32) + p[:, 0:1]
    h = bn_relu(h, p[:, 1:2], p[:, 2:3])

    # ---- layer 2: Linear -> BN(batch stats) -> ReLU ----
    h = jnp.dot(w2_ref[...], h, preferred_element_type=jnp.float32) + p[:, 3:4]
    h = bn_relu(h, p[:, 4:5], p[:, 5:6])

    # ---- layer 3 (last): Linear only (last_act=None) ----
    y = jnp.dot(w3_ref[...], h, preferred_element_type=jnp.float32) + p[0:8, 6:7]

    out_ref[...] = y.astype(out_ref.dtype)


def _pack_param_slab(params):
    """Pack b1,g1,be1,b2,g2,be2,b3 into a single (32, 8) f32 slab (column-wise)."""
    def col(v):
        v = jnp.asarray(v, jnp.float32)
        return jnp.pad(v, (0, _PMAX - v.shape[0]))
    cols = [
        col(params[0]["b"]), col(params[0]["gamma"]), col(params[0]["beta"]),
        col(params[1]["b"]), col(params[1]["gamma"]), col(params[1]["beta"]),
        col(params[2]["b"]), jnp.zeros((_PMAX,), jnp.float32),
    ]
    return jnp.stack(cols, axis=1)          # (32, 8)


def mlp_forward(x, params):
    """x: (batch, 16); params: PyTorch-style list of per-layer dicts (w is (out,in))."""
    batch = x.shape[0]
    out_dim = LAYER_SZS[-1]

    x_t = jnp.transpose(x).astype(jnp.float32)      # (in, batch): batch -> lanes
    slab = _pack_param_slab(params)

    vmem_spec = pl.BlockSpec(memory_space=pltpu.MemorySpace.VMEM)
    y_t = pl.pallas_call(
        mlp_kernel,
        out_shape=jax.ShapeDtypeStruct((out_dim, batch), jnp.float32),
        in_specs=[vmem_spec] * 5,
        out_specs=vmem_spec,
    )(x_t, params[0]["w"], params[1]["w"], params[2]["w"], slab)

    return jnp.transpose(y_t)                        # back to (batch, out)
    # TODO(synk): for realistic batch sizes add a batch grid with a two-phase
    # (sum/sumsq then normalize) BN reduction before marking the axis parallel.


def init_params(key, layer_szs):
    """PyTorch nn.Linear-style init; weights stored (out, in) like torch."""
    params = []
    n_layers = len(layer_szs) - 1
    for i in range(n_layers):
        fan_in, fan_out = layer_szs[i], layer_szs[i + 1]
        key, kw, kb = jax.random.split(key, 3)
        bound = 1.0 / jnp.sqrt(fan_in)
        w = jax.random.uniform(kw, (fan_out, fan_in), jnp.float32, -bound, bound)
        b = jax.random.uniform(kb, (fan_out,), jnp.float32, -bound, bound)
        p = {"w": w, "b": b}
        if i != n_layers - 1:
            p["gamma"] = jnp.ones((fan_out,), jnp.float32)   # BN affine init
            p["beta"] = jnp.zeros((fan_out,), jnp.float32)
        params.append(p)
    return params


if __name__ == "__main__":
    key = jax.random.PRNGKey(0)
    key, kx = jax.random.split(key)
    batch = 128   # fills the 128-lane axis in the (features, batch) layout
    x = jax.random.normal(kx, (batch, LAYER_SZS[0]), jnp.float32)

    params = init_params(key, LAYER_SZS)

    out = mlp_forward(x, params)
    jax.block_until_ready(out)

    # sanity check vs pure-JAX reference (PyTorch conventions, w is (out, in))
    h = x
    for i, p in enumerate(params):
        h = h @ p["w"].T + p["b"]
        if i != len(params) - 1:
            mean = h.mean(axis=0, keepdims=True)
            var = ((h - mean) ** 2).mean(axis=0, keepdims=True)
            h = p["gamma"] * (h - mean) * jax.lax.rsqrt(var + BN_EPS) + p["beta"]
            h = jnp.maximum(h, 0.0)
    assert out.shape == (batch, LAYER_SZS[-1])
    assert jnp.allclose(out, h, atol=1e-4, rtol=1e-4)

    print("KERNEL_OK")
</pallas_src>

<mosaic_0001>
module attributes {stable_mosaic.version = 11 : i64} {
  func.func @mlp_kernel(%arg0: memref<16x128xf32, #tpu.memory_space<vmem>>, %arg1: memref<32x16xf32, #tpu.memory_space<vmem>>, %arg2: memref<32x32xf32, #tpu.memory_space<vmem>>, %arg3: memref<8x32xf32, #tpu.memory_space<vmem>>, %arg4: memref<32x8xf32, #tpu.memory_space<vmem>>, %arg5: memref<8x128xf32, #tpu.memory_space<vmem>>) attributes {dimension_semantics = [], scalar_prefetch = 0 : i64, scratch_operands = 0 : i64, tpu.core_type = #tpu.core_type<tc>} {
    %c0 = arith.constant 0 : index
    %c0_0 = arith.constant 0 : index
    %0 = vector.load %arg0[%c0, %c0_0] : memref<16x128xf32, #tpu.memory_space<vmem>>, vector<16x128xf32>
    %c0_1 = arith.constant 0 : index
    %c0_2 = arith.constant 0 : index
    %1 = vector.load %arg4[%c0_1, %c0_2] : memref<32x8xf32, #tpu.memory_space<vmem>>, vector<32x8xf32>
    %c0_3 = arith.constant 0 : index
    %c0_4 = arith.constant 0 : index
    %2 = vector.load %arg1[%c0_3, %c0_4] : memref<32x16xf32, #tpu.memory_space<vmem>>, vector<32x16xf32>
    %cst = arith.constant dense<0.000000e+00> : vector<32x128xf32>
    %3 = tpu.matmul %2, %0, %cst {dimension_numbers = #tpu.dot_dimension_numbers<[1], [0], [0], [1], [0, 0, 1, 1], [], []>} : vector<32x16xf32>, vector<16x128xf32>, vector<32x128xf32> -> vector<32x128xf32>
    %4 = vector.extract_strided_slice %1 {offsets = [0, 0], sizes = [32, 1], strides = [1, 1]} : vector<32x8xf32> to vector<32x1xf32>
    %5 = vector.broadcast %4 : vector<32x1xf32> to vector<32x128xf32>
    %6 = arith.addf %3, %5 : vector<32x128xf32>
    %7 = vector.extract_strided_slice %1 {offsets = [0, 1], sizes = [32, 1], strides = [1, 1]} : vector<32x8xf32> to vector<32x1xf32>
    %8 = vector.extract_strided_slice %1 {offsets = [0, 2], sizes = [32, 1], strides = [1, 1]} : vector<32x8xf32> to vector<32x1xf32>
    %cst_5 = arith.constant dense<0.000000e+00> : vector<32xf32>
    %9 = vector.multi_reduction <add>, %6, %cst_5 [1] : vector<32x128xf32> to vector<32xf32>
    %10 = vector.shape_cast %9 : vector<32xf32> to vector<32x1xf32>
    %11 = arith.mulf %6, %6 : vector<32x128xf32>
    %cst_6 = arith.constant dense<0.000000e+00> : vector<32xf32>
    %12 = vector.multi_reduction <add>, %11, %cst_6 [1] : vector<32x128xf32> to vector<32xf32>
    %13 = vector.shape_cast %12 : vector<32xf32> to vector<32x1xf32>
    %cst_7 = arith.constant 7.812500e-03 : f32
    %14 = vector.broadcast %cst_7 : f32 to vector<32x1xf32>
    %15 = arith.mulf %10, %14 : vector<32x1xf32>
    %cst_8 = arith.constant 7.812500e-03 : f32
    %16 = vector.broadcast %cst_8 : f32 to vector<32x1xf32>
    %17 = arith.mulf %13, %16 : vector<32x1xf32>
    %18 = arith.mulf %15, %15 : vector<32x1xf32>
    %19 = arith.subf %17, %18 : vector<32x1xf32>
    %cst_9 = arith.constant 9.99999974E-6 : f32
    %20 = vector.broadcast %cst_9 : f32 to vector<32x1xf32>
    %21 = arith.addf %19, %20 : vector<32x1xf32>
    %22 = math.rsqrt %21 : vector<32x1xf32>
    %23 = arith.mulf %7, %22 : vector<32x1xf32>
    %24 = arith.mulf %15, %23 : vector<32x1xf32>
    %25 = arith.subf %8, %24 : vector<32x1xf32>
    %26 = vector.broadcast %23 : vector<32x1xf32> to vector<32x128xf32>
    %27 = arith.mulf %6, %26 : vector<32x128xf32>
    %28 = vector.broadcast %25 : vector<32x1xf32> to vector<32x128xf32>
    %29 = arith.addf %27, %28 : vector<32x128xf32>
    %cst_10 = arith.constant 0.000000e+00 : f32
    %30 = vector.broadcast %cst_10 : f32 to vector<32x128xf32>
    %31 = arith.maximumf %29, %30 : vector<32x128xf32>
    %c0_11 = arith.constant 0 : index
    %c0_12 = arith.constant 0 : index
    %32 = vector.load %arg2[%c0_11, %c0_12] : memref<32x32xf32, #tpu.memory_space<vmem>>, vector<32x32xf32>
    %cst_13 = arith.constant dense<0.000000e+00> : vector<32x128xf32>
    %33 = tpu.matmul %32, %31, %cst_13 {dimension_numbers = #tpu.dot_dimension_numbers<[1], [0], [0], [1], [0, 0, 1, 1], [], []>} : vector<32x32xf32>, vector<32x128xf32>, vector<32x128xf32> -> vector<32x128xf32>
    %34 = vector.extract_strided_slice %1 {offsets = [0, 3], sizes = [32, 1], strides = [1, 1]} : vector<32x8xf32> to vector<32x1xf32>
    %35 = vector.broadcast %34 : vector<32x1xf32> to vector<32x128xf32>
    %36 = arith.addf %33, %35 : vector<32x128xf32>
    %37 = vector.extract_strided_slice %1 {offsets = [0, 4], sizes = [32, 1], strides = [1, 1]} : vector<32x8xf32> to vector<32x1xf32>
    %38 = vector.extract_strided_slice %1 {offsets = [0, 5], sizes = [32, 1], strides = [1, 1]} : vector<32x8xf32> to vector<32x1xf32>
    %cst_14 = arith.constant dense<0.000000e+00> : vector<32xf32>
    %39 = vector.multi_reduction <add>, %36, %cst_14 [1] : vector<32x128xf32> to vector<32xf32>
    %40 = vector.shape_cast %39 : vector<32xf32> to vector<32x1xf32>
    %41 = arith.mulf %36, %36 : vector<32x128xf32>
    %cst_15 = arith.constant dense<0.000000e+00> : vector<32xf32>
    %42 = vector.multi_reduction <add>, %41, %cst_15 [1] : vector<32x128xf32> to vector<32xf32>
    %43 = vector.shape_cast %42 : vector<32xf32> to vector<32x1xf32>
    %cst_16 = arith.constant 7.812500e-03 : f32
    %44 = vector.broadcast %cst_16 : f32 to vector<32x1xf32>
    %45 = arith.mulf %40, %44 : vector<32x1xf32>
    %cst_17 = arith.constant 7.812500e-03 : f32
    %46 = vector.broadcast %cst_17 : f32 to vector<32x1xf32>
    %47 = arith.mulf %43, %46 : vector<32x1xf32>
    %48 = arith.mulf %45, %45 : vector<32x1xf32>
    %49 = arith.subf %47, %48 : vector<32x1xf32>
    %cst_18 = arith.constant 9.99999974E-6 : f32
    %50 = vector.broadcast %cst_18 : f32 to vector<32x1xf32>
    %51 = arith.addf %49, %50 : vector<32x1xf32>
    %52 = math.rsqrt %51 : vector<32x1xf32>
    %53 = arith.mulf %37, %52 : vector<32x1xf32>
    %54 = arith.mulf %45, %53 : vector<32x1xf32>
    %55 = arith.subf %38, %54 : vector<32x1xf32>
    %56 = vector.broadcast %53 : vector<32x1xf32> to vector<32x128xf32>
    %57 = arith.mulf %36, %56 : vector<32x128xf32>
    %58 = vector.broadcast %55 : vector<32x1xf32> to vector<32x128xf32>
    %59 = arith.addf %57, %58 : vector<32x128xf32>
    %cst_19 = arith.constant 0.000000e+00 : f32
    %60 = vector.broadcast %cst_19 : f32 to vector<32x128xf32>
    %61 = arith.maximumf %59, %60 : vector<32x128xf32>
    %c0_20 = arith.constant 0 : index
    %c0_21 = arith.constant 0 : index
    %62 = vector.load %arg3[%c0_20, %c0_21] : memref<8x32xf32, #tpu.memory_space<vmem>>, vector<8x32xf32>
    %cst_22 = arith.constant dense<0.000000e+00> : vector<8x128xf32>
    %63 = tpu.matmul %62, %61, %cst_22 {dimension_numbers = #tpu.dot_dimension_numbers<[1], [0], [0], [1], [0, 0, 1, 1], [], []>} : vector<8x32xf32>, vector<32x128xf32>, vector<8x128xf32> -> vector<8x128xf32>
    %64 = vector.extract_strided_slice %1 {offsets = [0, 6], sizes = [8, 1], strides = [1, 1]} : vector<32x8xf32> to vector<8x1xf32>
    %65 = vector.broadcast %64 : vector<8x1xf32> to vector<8x128xf32>
    %66 = arith.addf %63, %65 : vector<8x128xf32>
    %c0_23 = arith.constant 0 : index
    %c0_24 = arith.constant 0 : index
    %67 = vector.load %arg5[%c0_23, %c0_24] : memref<8x128xf32, #tpu.memory_space<vmem>>, vector<8x128xf32>
    tpu.vector_store %arg5[%c0_23, %c0_24], %66 {strides = array<i32>} : memref<8x128xf32, #tpu.memory_space<vmem>>, vector<8x128xf32>,
    return
  }
}

</mosaic_0001>

<bundles_post_ra>
// kernel: tpu_custom_call.1
= control target key start
LH: loop header
LB: loop body
LE: loop exit
PB: predicated region body
PF: predicated region fallthrough
CT: control target
= control target key end

     0   :  { %vm51_vm0 = vcmask 130048   ;;  %v755_v4 = vmov 0   ;;  %s952_s0 = inlined_call_operand.vmem [shape: f32[16,128], index: 0, kind: input, shape index: {}]   ;;  %s953_s1 = inlined_call_operand.vmem [shape: f32[32,16], index: 1, kind: input, shape index: {}]   ;;  %s954_s2 = inlined_call_operand.vmem [shape: f32[32,32], index: 2, kind: input, shape index: {}]   ;;  %s955_s3 = inlined_call_operand.vmem [shape: f32[8,32], index: 3, kind: input, shape index: {}]   ;;  %s956_s4 = inlined_call_operand.vmem [shape: f32[32,8], index: 4, kind: input, shape index: {}]   ;;  %s957_s5 = inlined_call_operand.hbm [shape: f32[8,128], index: 5, kind: output, shape index: {}]  }
   0x1   :  { %v21_v0 = vld [vmem:[%s952_s0] sm:$0xff]  ;;  %v22_v1 = vld [vmem:[%s952_s0 + $0x8] sm:$0xff]  ;;  %701 = vset.pattern.permute.xlu0 %v755_v4  ;;  %702 = vset.pattern.permute.xlu1 %v755_v4  ;;  %v815_v6 = vld [vmem:[%s956_s4 + $0x10] sm:$0xff] }
   0x2   :  { %v27_v2 = vld [vmem:[%s953_s1] sm:$0xff]  ;;  %v671_v3 = vpack.c.bf16 %v22_v1, %v21_v0 }
   0x3   :  { %640 = vmatprep.mubr.msk.f32.mxu0 %vm51_vm0, %v27_v2  ;;  %v810_v5 = vld [vmem:[%s956_s4] sm:$0xff] }
   0x4   :  { %672 = vmatprep.subr.bf16.mxu0 %v671_v3  ;;  %33 = vperm.xlu0 %701, %v810_v5  }
   0x5   :  { %10 = vsyncpa [#allocation3], 0  ;;  %674 = vmatpush3.bf16.msra.mxu0 %v671_v3  ;;  %v28_v7 = vld [vmem:[%s953_s1 + $0x8] sm:$0xff]  ;;  %43 = vperm.xlu1 %702, %v815_v6   ;;  %v29_v9 = vld [vmem:[%s953_s1 + $0x10] sm:$0xff]  ;;  %v756_v28 = vmov 1   ;;  %v758_v4 = vmov 2  }
   0x6   :  { %v824_v8 = vld [vmem:[%s956_s4 + $0x8] sm:$0xff]  ;;  %v833_v10 = vld [vmem:[%s956_s4 + $0x18] sm:$0xff]  ;;  %vm293_vm1 = vcmask 261120   ;;  %vm763_vm2 = vmmov 0   ;;  %s766_s20 = smov [#allocation2]  }
   0x7   :  { %v30_v11 = vld [vmem:[%s953_s1 + $0x18] sm:$0xff]  ;;  %s757_s1 = smov 1   ;;  %s600_s21 = sshll.u32 %s766_s20, 4  ;;  %s601_s21 = int_to_ptr.vmem [resolvable:$true] %s600_s21 }
   0x8   :  { %641 = vmatmul.mubr.msk.f32.vlgmr.msra.gmra.mrb[0].mxu0 %vm51_vm0, %v28_v7  ;;  %38 = vperm.xlu0 %701, %v824_v8   ;;  %s731_s22 = scalar_lea.vmem %s601_s21, 128  ;;  %p736_p1 = scmp.lt.s32.totalorder %s601_s21, %s601_s21 }
   0x9   :  { %643 = vmatprep.mubr.msk.f32.mxu0 %vm51_vm0, %v29_v9  ;;  %48 = vperm.xlu1 %702, %v833_v10   ;;  %p732_p0 = scmp.ne.s32.totalorder %s601_s21, %s731_s22  ;;  %p737_p2 = scmp.lt.s32.totalorder %s731_s22, %s731_s22 }
   0xb   :  { %p738_p3 = por %p737_p2, %p736_p1 }
   0xc   :  { %644 = vmatmul.mubr.msk.f32.gmra.mrb[2].mxu0 %vm51_vm0, %v30_v11  ;;  %703 = vset.pattern.permute.xlu0 %v756_v28 }
   0xd   :  { %704 = vset.pattern.permute.xlu1 %v756_v28  ;;  %p739_p4 = pnand %p738_p3, %p732_p0 }
  0x83   :  { %v34_v12 = vpop.permute.xlu0 %33 }
  0x84   :  { %v44_v18 = vpop.permute.xlu1 %43 }
  0x87   :  { %v39_v13 = vpop.permute.xlu0 %38 }
  0x88   :  { %v49_v25 = vpop.permute.xlu1 %48 }
  0xdb   :  { %v642_v14 = vpop.f32.mrb[0].mxu0 }
  0xdc   :  { %v843_v15 = vadd.f32 %v642_v14, %v39_v13  ;;  %v130_v16 = vpop.f32.mrb[1].mxu0 }
  0xdd   :  { %v845_v17 = vadd.f32 %v130_v16, %v34_v12 }
  0xde   :  { %151 = vadd.xlane.f32.xlu1 %v843_v15  ;;  %v158_v22 = vmul.f32 %v843_v15, %v843_v15 }
  0xdf   :  { %v645_v19 = vpop.f32.mrb[2].mxu0  ;;  %149 = vadd.xlane.f32.xlu0 %v845_v17  ;;  %v157_v24 = vmul.f32 %v845_v17, %v845_v17 }
  0xe0   :  { %v140_v20 = vpop.f32.mrb[3].mxu0  ;;  %v858_v26 = vadd.f32 %v645_v19, %v49_v25 }
  0xe1   :  { %v849_v21 = vadd.f32 %v140_v20, %v44_v18  ;;  %v273_v20 = vld [vmem:[%s954_s2] sm:$0xff] }
  0xe2   :  { %v160_v27 = vmul.f32 %v858_v26, %v858_v26  ;;  %654 = vmatprep.mubr.msk.f32.mxu1 %vm293_vm1, %v273_v20 }
  0xe3   :  { %153 = vadd.xlane.f32.xlu1 %v849_v21  ;;  %163 = vadd.xlane.f32.xlu0 %v158_v22  ;;  %v159_v23 = vmul.f32 %v849_v21, %v849_v21  ;;  %v759_v22 = vmov 3  }
  0xe7   :  { %165 = vadd.xlane.f32.xlu1 %v159_v23  ;;  %161 = vadd.xlane.f32.xlu0 %v157_v24 }
  0xeb   :  { %155 = vadd.xlane.f32.xlu0 %v858_v26 }
  0xef   :  { %167 = vadd.xlane.f32.xlu0 %v160_v27 }
 0x16b   :  { %v152_v29 = vpop.xlane.xlu1 %151 }
 0x16c   :  { %v150_v30 = vpop.xlane.xlu0 %149  ;;  %v170_v31 = vmul.f32 0.0078125, %v152_v29 }
 0x16d   :  { %v169_v35 = vmul.f32 0.0078125, %v150_v30 }
 0x16e   :  { %v178_v34 = vmul.f32 %v170_v31, %v170_v31 }
 0x16f   :  { %v177_v42 = vmul.f32 %v169_v35, %v169_v35 }
 0x170   :  { %v154_v32 = vpop.xlane.xlu1 %153  ;;  %v164_v33 = vpop.xlane.xlu0 %163 }
 0x171   :  { %v171_v36 = vmul.f32 0.0078125, %v154_v32  ;;  %v174_v37 = vmul.f32 0.0078125, %v164_v33 }
 0x173   :  { %v179_v38 = vmul.f32 %v171_v36, %v171_v36  ;;  %v182_v39 = vsub.f32 %v174_v37, %v178_v34 }
 0x174   :  { %v166_v40 = vpop.xlane.xlu1 %165  ;;  %v162_v41 = vpop.xlane.xlu0 %161 }
 0x175   :  { %v186_v43 = vadd.f32 1e-05, %v182_v39  ;;  %v175_v44 = vmul.f32 0.0078125, %v166_v40  ;;  %v173_v45 = vmul.f32 0.0078125, %v162_v41 }
 0x177   :  { %715 = vrsqrt.f32 %v186_v43  ;;  %v183_v46 = vsub.f32 %v175_v44, %v179_v38  ;;  %v181_v47 = vsub.f32 %v173_v45, %v177_v42 }
 0x178   :  { %v156_v48 = vpop.xlane.xlu0 %155 }
 0x179   :  { %v187_v49 = vadd.f32 1e-05, %v183_v46  ;;  %v185_v50 = vadd.f32 1e-05, %v181_v47  ;;  %v172_v51 = vmul.f32 0.0078125, %v156_v48 }
 0x17b   :  { %717 = vrsqrt.f32 %v187_v49  ;;  %v180_v53 = vmul.f32 %v172_v51, %v172_v51 }
 0x17c   :  { %719 = vrsqrt.f32 %v185_v50  ;;  %v168_v52 = vpop.xlane.xlu0 %167 }
 0x17d   :  { %v176_v54 = vmul.f32 0.0078125, %v168_v52 }
 0x17f   :  { %v184_v55 = vsub.f32 %v176_v54, %v180_v53 }
 0x181   :  { %v716_v56 = vpop.eup %715  ;;  %v188_v57 = vadd.f32 1e-05, %v184_v55 }
 0x182   :  { %v194_v58 = vmul.f32 %v716_v56, %v824_v8 }
 0x183   :  { %721 = vrsqrt.f32 %v188_v57 }
 0x184   :  { %v198_v59 = vmul.f32 %v194_v58, %v170_v31 }
 0x185   :  { %v718_v60 = vpop.eup %717 }
 0x186   :  { %v720_v61 = vpop.eup %719  ;;  %207 = vrot.lane.b32.xlu0 %v198_v59, %s757_s1  ;;  %v195_v0 = vmul.f32 %v718_v60, %v815_v6 }
 0x187   :  { %v193_v62 = vmul.f32 %v720_v61, %v810_v5  ;;  %v760_v61 = vmov 4  }
 0x188   :  { %v199_v2 = vmul.f32 %v195_v0, %v171_v36 }
 0x189   :  { %v197_v63 = vmul.f32 %v193_v62, %v169_v35 }
 0x18a   :  { %223 = vperm.xlu0 %703, %v193_v62  }
 0x18b   :  { %205 = vrot.lane.b32.xlu1 %v197_v63, %s757_s1 }
 0x18d   :  { %v722_v1 = vpop.eup %721 }
 0x18e   :  { %v196_v3 = vmul.f32 %v722_v1, %v833_v10  ;;  %705 = vset.pattern.permute.xlu0 %v758_v4 }
 0x18f   :  { %209 = vrot.lane.b32.xlu1 %v199_v2, %s757_s1 }
 0x190   :  { %v200_v7 = vmul.f32 %v196_v3, %v172_v51 }
 0x193   :  { %211 = vrot.lane.b32.xlu1 %v200_v7, %s757_s1 }
 0x197   :  { %228 = vperm.xlu1 %704, %v194_v58  }
 0x19b   :  { %233 = vperm.xlu1 %704, %v195_v0  }
 0x19f   :  { %238 = vperm.xlu1 %704, %v196_v3  }
 0x1a3   :  { %706 = vset.pattern.permute.xlu1 %v758_v4 }
 0x1f8   :  { %v208_v9 = vpop.permute.xlu0 %207 }
 0x1f9   :  { %v218_v11 = vsub.f32 %v824_v8, %v208_v9 }
 0x1fb   :  { %252 = vperm.xlu0 %705, %v218_v11  }
 0x1fd   :  { %v206_v12 = vpop.permute.xlu1 %205 }
 0x1fe   :  { %v217_v13 = vsub.f32 %v810_v5, %v206_v12 }
 0x200   :  { %247 = vperm.xlu1 %706, %v217_v13  }
 0x201   :  { %v210_v14 = vpop.permute.xlu1 %209 }
 0x202   :  { %v219_v16 = vsub.f32 %v815_v6, %v210_v14 }
 0x204   :  { %257 = vperm.xlu0 %705, %v219_v16  }
 0x205   :  { %v212_v18 = vpop.permute.xlu1 %211 }
 0x206   :  { %v220_v19 = vsub.f32 %v833_v10, %v212_v18 }
 0x208   :  { %262 = vperm.xlu1 %706, %v220_v19   ;;  %707 = vset.pattern.permute.xlu0 %v759_v22 }
 0x209   :  { %278 = vperm.xlu0 %707, %v810_v5   ;;  %v224_v25 = vpop.permute.xlu0 %223 }
 0x20a   :  { %v241_v30 = vmul.f32 %v224_v25, %v845_v17  ;;  %v274_v17 = vld [vmem:[%s954_s2 + $0x8] sm:$0xff] }
 0x20c   :  { %708 = vset.pattern.permute.xlu1 %v759_v22 }
 0x20d   :  { %282 = vperm.xlu1 %708, %v824_v8   ;;  %290 = vperm.xlu0 %707, %v833_v10  }
 0x211   :  { %286 = vperm.xlu1 %708, %v815_v6   ;;  %710 = vset.pattern.permute.xlu0 %v760_v61 }
 0x215   :  { %709 = vset.pattern.permute.xlu1 %v760_v61 }
 0x216   :  { %v229_v23 = vpop.permute.xlu1 %228 }
 0x217   :  { %v242_v29 = vmul.f32 %v229_v23, %v843_v15 }
 0x21a   :  { %v234_v24 = vpop.permute.xlu1 %233 }
 0x21b   :  { %v243_v37 = vmul.f32 %v234_v24, %v849_v21  ;;  %v275_v21 = vld [vmem:[%s954_s2 + $0x10] sm:$0xff] }
 0x21e   :  { %v239_v27 = vpop.permute.xlu1 %238 }
 0x21f   :  { %v244_v39 = vmul.f32 %v239_v27, %v858_v26  ;;  %v276_v26 = vld [vmem:[%s954_s2 + $0x18] sm:$0xff] }
 0x27a   :  { %v253_v28 = vpop.permute.xlu0 %252 }
 0x27b   :  { %v266_v31 = vadd.f32 %v253_v28, %v242_v29 }
 0x27d   :  { %v270_v34 = vmax.f32 %v266_v31, 0.0 }
 0x27f   :  { %v248_v32 = vpop.permute.xlu1 %247 }
 0x280   :  { %v265_v33 = vadd.f32 %v248_v32, %v241_v30 }
 0x282   :  { %v269_v35 = vmax.f32 %v265_v33, 0.0 }
 0x283   :  { %v258_v36 = vpop.permute.xlu0 %257 }
 0x284   :  { %v675_v38 = vpack.c.bf16 %v270_v34, %v269_v35  ;;  %v267_v40 = vadd.f32 %v258_v36, %v243_v37 }
 0x286   :  { %676 = vmatprep.subr.bf16.mxu1 %v675_v38  ;;  %v271_v43 = vmax.f32 %v267_v40, 0.0 }
 0x287   :  { %v263_v41 = vpop.permute.xlu1 %262  ;;  %678 = vmatpush3.bf16.msra.mxu1 %v675_v38 }
 0x288   :  { %v268_v42 = vadd.f32 %v263_v41, %v244_v39  ;;  %v279_v47 = vpop.permute.xlu0 %278 }
 0x28a   :  { %v272_v15 = vmax.f32 %v268_v42, 0.0 }
 0x28c   :  { %v679_v44 = vpack.c.bf16 %v272_v15, %v271_v43  ;;  %v283_v45 = vpop.permute.xlu1 %282  ;;  %v291_v56 = vpop.permute.xlu0 %290 }
 0x28e   :  { %680 = vmatprep.subr.bf16.mxu1 %v679_v44 }
 0x28f   :  { %682 = vmatpush3.bf16.msra.mxu1 %v679_v44 }
 0x290   :  { %v287_v55 = vpop.permute.xlu1 %286 }
 0x292   :  { %655 = vmatmul.mubr.msk.f32.vlgmr.msra.gmra.mrb[0].mxu1 %vm293_vm1, %v274_v17  ;;  %v761_v17 = vmov 5  }
 0x293   :  { %657 = vmatprep.mubr.msk.f32.mxu1 %vm293_vm1, %v275_v21 }
 0x296   :  { %658 = vmatmul.mubr.msk.f32.gmra.mrb[2].mxu1 %vm293_vm1, %v276_v26 }
 0x365   :  { %v656_v46 = vpop.f32.mrb[0].mxu1 }
 0x366   :  { %v899_v48 = vadd.f32 %v656_v46, %v283_v45  ;;  %v372_v49 = vpop.f32.mrb[1].mxu1 }
 0x367   :  { %v901_v50 = vadd.f32 %v372_v49, %v279_v47 }
 0x368   :  { %393 = vadd.xlane.f32.xlu0 %v899_v48  ;;  %v400_v54 = vmul.f32 %v899_v48, %v899_v48 }
 0x369   :  { %v659_v51 = vpop.f32.mrb[2].mxu1  ;;  %391 = vadd.xlane.f32.xlu1 %v901_v50  ;;  %v399_v52 = vmul.f32 %v901_v50, %v901_v50 }
 0x36a   :  { %v382_v53 = vpop.f32.mrb[3].mxu1  ;;  %v911_v58 = vadd.f32 %v659_v51, %v291_v56 }
 0x36b   :  { %v909_v57 = vadd.f32 %v382_v53, %v287_v55  ;;  %v762_v53 = vmov 0.0|0.0   ;;  %v765_v55 = vmov 6  }
 0x36c   :  { %403 = vadd.xlane.f32.xlu0 %v399_v52  ;;  %v402_v60 = vmul.f32 %v911_v58, %v911_v58  ;;  %683 = vmatprep.subr.bf16.mxu0 %v762_v53 }
 0x36d   :  { %405 = vadd.xlane.f32.xlu1 %v400_v54  ;;  %v401_v59 = vmul.f32 %v909_v57, %v909_v57  ;;  %v764_v54 = vmov 0.0  }
 0x36e   :  { %668 = vmatprep.mubr.msk.f32.mxu0 %vm763_vm2, %v764_v54 }
 0x370   :  { %395 = vadd.xlane.f32.xlu0 %v909_v57 }
 0x371   :  { %397 = vadd.xlane.f32.xlu1 %v911_v58 }
 0x374   :  { %407 = vadd.xlane.f32.xlu0 %v401_v59 }
 0x375   :  { %409 = vadd.xlane.f32.xlu1 %v402_v60 }
 0x3f5   :  { %v394_v62 = vpop.xlane.xlu0 %393 }
 0x3f6   :  { %v392_v63 = vpop.xlane.xlu1 %391  ;;  %v412_v0 = vmul.f32 0.0078125, %v394_v62 }
 0x3f7   :  { %v411_v1 = vmul.f32 0.0078125, %v392_v63 }
 0x3f8   :  { %v420_v9 = vmul.f32 %v412_v0, %v412_v0 }
 0x3f9   :  { %v419_v2 = vmul.f32 %v411_v1, %v411_v1  ;;  %v404_v3 = vpop.xlane.xlu0 %403 }
 0x3fa   :  { %v415_v4 = vmul.f32 0.0078125, %v404_v3  ;;  %v406_v7 = vpop.xlane.xlu1 %405 }
 0x3fb   :  { %v416_v11 = vmul.f32 0.0078125, %v406_v7 }
 0x3fc   :  { %v423_v12 = vsub.f32 %v415_v4, %v419_v2 }
 0x3fd   :  { %v424_v13 = vsub.f32 %v416_v11, %v420_v9  ;;  %v396_v14 = vpop.xlane.xlu0 %395 }
 0x3fe   :  { %v427_v16 = vadd.f32 1e-05, %v423_v12  ;;  %v413_v18 = vmul.f32 0.0078125, %v396_v14  ;;  %v398_v19 = vpop.xlane.xlu1 %397 }
 0x3ff   :  { %v428_v20 = vadd.f32 1e-05, %v424_v13  ;;  %v414_v22 = vmul.f32 0.0078125, %v398_v19 }
 0x400   :  { %723 = vrsqrt.f32 %v427_v16  ;;  %v421_v24 = vmul.f32 %v413_v18, %v413_v18 }
 0x401   :  { %725 = vrsqrt.f32 %v428_v20  ;;  %v408_v23 = vpop.xlane.xlu0 %407  ;;  %v422_v28 = vmul.f32 %v414_v22, %v414_v22 }
 0x402   :  { %v417_v25 = vmul.f32 0.0078125, %v408_v23  ;;  %v410_v27 = vpop.xlane.xlu1 %409 }
 0x403   :  { %v418_v29 = vmul.f32 0.0078125, %v410_v27 }
 0x404   :  { %v425_v30 = vsub.f32 %v417_v25, %v421_v24 }
 0x405   :  { %v426_v31 = vsub.f32 %v418_v29, %v422_v28 }
 0x406   :  { %v429_v32 = vadd.f32 1e-05, %v425_v30 }
 0x407   :  { %v430_v33 = vadd.f32 1e-05, %v426_v31 }
 0x408   :  { %727 = vrsqrt.f32 %v429_v32 }
 0x409   :  { %729 = vrsqrt.f32 %v430_v33 }
 0x40a   :  { %v724_v34 = vpop.eup %723 }
 0x40b   :  { %v726_v35 = vpop.eup %725  ;;  %v435_v36 = vmul.f32 %v724_v34, %v810_v5 }
 0x40c   :  { %v436_v37 = vmul.f32 %v726_v35, %v824_v8 }
 0x40d   :  { %v439_v38 = vmul.f32 %v435_v36, %v411_v1 }
 0x40e   :  { %v440_v39 = vmul.f32 %v436_v37, %v412_v0 }
 0x40f   :  { %447 = vrot.lane.b32.xlu0 %v439_v38, %s757_s1 }
 0x410   :  { %449 = vrot.lane.b32.xlu1 %v440_v39, %s757_s1 }
 0x412   :  { %v728_v40 = vpop.eup %727 }
 0x413   :  { %v730_v41 = vpop.eup %729  ;;  %v437_v42 = vmul.f32 %v728_v40, %v815_v6 }
 0x414   :  { %v438_v43 = vmul.f32 %v730_v41, %v833_v10 }
 0x415   :  { %v441_v15 = vmul.f32 %v437_v42, %v413_v18 }
 0x416   :  { %v442_v44 = vmul.f32 %v438_v43, %v414_v22 }
 0x417   :  { %451 = vrot.lane.b32.xlu1 %v441_v15, %s757_s1 }
 0x418   :  { %453 = vrot.lane.b32.xlu0 %v442_v44, %s757_s1 }
 0x41b   :  { %465 = vperm.xlu1 %709, %v435_v36  }
 0x41c   :  { %470 = vperm.xlu0 %710, %v436_v37  }
 0x41f   :  { %480 = vperm.xlu1 %709, %v438_v43  }
 0x420   :  { %475 = vperm.xlu0 %710, %v437_v42  }
 0x423   :  { %711 = vset.pattern.permute.xlu1 %v761_v17 }
 0x424   :  { %712 = vset.pattern.permute.xlu0 %v761_v17 }
 0x481   :  { %v448_v45 = vpop.permute.xlu0 %447 }
 0x482   :  { %v450_v21 = vpop.permute.xlu1 %449  ;;  %v459_v46 = vsub.f32 %v810_v5, %v448_v45 }
 0x483   :  { %v460_v26 = vsub.f32 %v824_v8, %v450_v21 }
 0x485   :  { %494 = vperm.xlu1 %711, %v460_v26  }
 0x489   :  { %v452_v47 = vpop.permute.xlu1 %451  ;;  %489 = vperm.xlu1 %711, %v459_v46  }
 0x48a   :  { %v461_v49 = vsub.f32 %v815_v6, %v452_v47  ;;  %v454_v51 = vpop.permute.xlu0 %453 }
 0x48b   :  { %v462_v52 = vsub.f32 %v833_v10, %v454_v51 }
 0x48c   :  { %499 = vperm.xlu0 %712, %v461_v49  }
 0x48d   :  { %504 = vperm.xlu1 %711, %v462_v52  }
 0x490   :  { %714 = vset.pattern.permute.xlu0 %v765_v55 }
 0x491   :  { %713 = vset.pattern.permute.xlu1 %v765_v55 }
 0x492   :  { %517 = vperm.xlu1 %713, %v810_v5  }
 0x49a   :  { %v466_v8 = vpop.permute.xlu1 %465 }
 0x49b   :  { %v471_v59 = vpop.permute.xlu0 %470  ;;  %v483_v10 = vmul.f32 %v466_v8, %v901_v50  ;;  %v515_v50 = vld [vmem:[%s955_s3] sm:$0xff] }
 0x49c   :  { %v484_v6 = vmul.f32 %v471_v59, %v899_v48 }
 0x49e   :  { %v481_v56 = vpop.permute.xlu1 %480 }
 0x49f   :  { %v476_v61 = vpop.permute.xlu0 %475  ;;  %v486_v2 = vmul.f32 %v481_v56, %v911_v58 }
 0x4a0   :  { %v485_v1 = vmul.f32 %v476_v61, %v909_v57 }
 0x504   :  { %v495_v60 = vpop.permute.xlu1 %494 }
 0x505   :  { %v508_v62 = vadd.f32 %v495_v60, %v484_v6 }
 0x507   :  { %v512_v3 = vmax.f32 %v508_v62, 0.0 }
 0x508   :  { %v490_v63 = vpop.permute.xlu1 %489 }
 0x509   :  { %v507_v0 = vadd.f32 %v490_v63, %v483_v10 }
 0x50b   :  { %v511_v4 = vmax.f32 %v507_v0, 0.0  ;;  %v500_v7 = vpop.permute.xlu0 %499 }
 0x50c   :  { %v509_v5 = vadd.f32 %v500_v7, %v485_v1  ;;  %v505_v9 = vpop.permute.xlu1 %504 }
 0x50d   :  { %v684_v11 = vpack.c.bf16 %v512_v3, %v511_v4  ;;  %v510_v12 = vadd.f32 %v505_v9, %v486_v2 }
 0x50e   :  { %v513_v13 = vmax.f32 %v509_v5, 0.0 }
 0x50f   :  { %v514_v14 = vmax.f32 %v510_v12, 0.0  ;;  %685 = vmatpush3.bf16.msra.mxu0 %v684_v11 }
 0x510   :  { %686 = vmatprep.subr.bf16.mxu0 %v762_v53 }
 0x511   :  { %v687_v48 = vpack.c.bf16 %v514_v14, %v513_v13  ;;  %v518_v57 = vpop.permute.xlu1 %517 }
 0x513   :  { %688 = vmatpush3.bf16.msra.mxu0 %v687_v48 }
 0x516   :  { %669 = vmatmul.mubr.msk.f32.vlgmr.msra.gmra.mrb[4].mxu0 %vm293_vm1, %v515_v50 }
 0x5e9   :  { %v589_v58 = vpop.f32.mrb[4].mxu0 }
 0x5ea   :  { %v590_v16 = vadd.f32 %v589_v58, %v518_v57  ;;  %v670_v18 = vpop.f32.mrb[5].mxu0 }
 0x5ec   :  { %593 = vst [vmem:[#allocation2] sm:$0xff] %v590_v16 }
 0x5ed   :  { %742 = shalt.err (!%p739_p4)
}
 0x5ee   :  { %s743_s3 = scalar_lea.hbm %s957_s5, 128 }
 0x5ef   :  { %p744_p5 = scmp.ne.s32.totalorder %s957_s5, %s743_s3  ;;  %p747_p6 = scmp.lt.u32.totalorder %s743_s3, %s957_s5 }
 0x5f1   :  { %p749_p7 = pnand %p747_p6, %p744_p5 }
 0x5f3   :  { %752 = shalt.err (!%p749_p7)
}
 0x5f4   :  { %603 = dma.vmem_to_hbm [thread:$0]  %s601_s21, 128, %s957_s5, [#allocation3]  }
 0x5f5   :  { %753 = dma.done.wait [#allocation3], 128  }
 0x5f6   :  { %754 = vsyncadd [#allocation3], 4294967168 }
 0x5f7   :  { %607 = vsyncpa [#allocation3], 1 }

</bundles_post_ra>
